<compile_context>
chip_gen: v5e
topology: v5e:2x2
jax: 0.10.0
libtpu: 0.0.40
codegen_flags: <defaults>
</compile_context>

<pallas_src>
import functools

import jax
import jax.numpy as jnp
import numpy as np
from jax import lax
from jax.experimental import pallas as pl
from jax.experimental.pallas import tpu as pltpu

ANCHORS = [[1.25, 1.625, 2.0, 3.75, 4.125, 2.875],
           [1.875, 3.8125, 3.875, 2.8125, 3.6875, 7.4375],
           [3.625, 2.8125, 4.875, 6.1875, 11.65625, 10.1875]]
STRIDES = [8.0, 16.0, 32.0]
NC = 80                      # number of classes (YOLOv5 default)
NO = NC + 5                  # outputs per anchor
NL = len(ANCHORS)            # number of detection layers
NA = len(ANCHORS[0]) // 2    # anchors per layer

MAX_SPATIAL_TILE = 2048      # lanes per tile: 85*2048*4 B ~ 0.7 MB per buffer


# ---------------------------------------------------------------------------
# Pallas kernel: decode one (1, no, ts) tile.
#   sublane axis = channel (no rows: 0,1 = xy, 2,3 = wh, 4.. = conf/classes)
#   lane axis    = flattened spatial index p = y*nx + x
# grid/anchor values are generated in-kernel; no side inputs are streamed.
# ---------------------------------------------------------------------------
def detect_kernel(x_ref, out_ref, *, stride, nx, ts, anchor_wh):
    # anchor (w, h) * stride for this block's anchor index (scalar select).
    a_idx = pl.program_id(0) % NA
    aw = jnp.where(a_idx == 0, anchor_wh[0][0],
                   jnp.where(a_idx == 1, anchor_wh[1][0], anchor_wh[2][0]))
    ah = jnp.where(a_idx == 0, anchor_wh[0][1],
                   jnp.where(a_idx == 1, anchor_wh[1][1], anchor_wh[2][1]))
    aw = aw.astype(jnp.float32)
    ah = ah.astype(jnp.float32)

    # grid (x - 0.5, y - 0.5) for the lanes of this tile.
    s0 = (pl.program_id(1) * ts).astype(jnp.float32)
    p = s0 + lax.broadcasted_iota(jnp.int32, (1, ts), 1).astype(jnp.float32)
    # exact floor-division by nx in f32 (p < 2^24, nx small; +0.5 guards the
    # exact-multiple rounding case).
    gy = jnp.floor((p + 0.5) * (1.0 / nx))
    gx = p - gy * nx
    gx = gx - 0.5
    gy = gy - 0.5

    # decode (pure elementwise, branchless blend over the channel rows).
    x = x_ref[0].astype(jnp.float32)                     # (no, ts)
    s = jax.nn.sigmoid(x)                                # EUP path
    row = lax.broadcasted_iota(jnp.int32, s.shape, 0)
    g = jnp.where(row == 0, gx, gy)                      # rows 0/1 -> gx/gy
    anc = jnp.where(row == 2, aw, ah)                    # rows 2/3 -> aw/ah
    xy = (s * 2.0 + g) * stride
    wh = (s * 2.0) ** 2 * anc
    out = jnp.where(row < 2, xy, jnp.where(row < 4, wh, s))
    out_ref[0] = out.astype(out_ref.dtype)


def _spatial_tile(sp):
    """Largest multiple-of-128 divisor of sp (capped), else the full extent."""
    for t in range(MAX_SPATIAL_TILE, 127, -128):
        if sp % t == 0:
            return t
    return sp


def detect_level(x_raw, level):
    """x_raw: (bs, na*no, ny, nx) f32 raw head output.
    Returns decoded boxes (bs, na*ny*nx, no)."""
    bs, _, ny, nx = x_raw.shape
    sp = ny * nx
    ts = _spatial_tile(sp)
    n_s = sp // ts

    # Pure reshape of the contiguous NCHW buffer -> (bs*na, no, ny*nx).
    xr = x_raw.reshape(bs * NA, NO, sp)

    anchor_wh = tuple(
        (float(ANCHORS[level][2 * a] * STRIDES[level]),
         float(ANCHORS[level][2 * a + 1] * STRIDES[level]))
        for a in range(NA))

    out = pl.pallas_call(
        functools.partial(detect_kernel, stride=float(STRIDES[level]),
                          nx=nx, ts=ts, anchor_wh=anchor_wh),
        out_shape=jax.ShapeDtypeStruct((bs * NA, NO, sp), jnp.float32),
        grid=(bs * NA, n_s),
        in_specs=[pl.BlockSpec((1, NO, ts), lambda i, j: (i, 0, j))],
        out_specs=pl.BlockSpec((1, NO, ts), lambda i, j: (i, 0, j)),
        compiler_params=pltpu.CompilerParams(
            dimension_semantics=("parallel", "parallel")),
    )(xr)

    # (bs*na, no, ny*nx) -> (bs, na*ny*nx, no) to match Detect's z layout.
    # TODO(synk): this final transpose (and the cross-level concat) could be
    # folded into a single fused pallas_call writing the concatenated slab.
    z = out.reshape(bs, NA, NO, ny, nx).transpose(0, 1, 3, 4, 2)
    return z.reshape(bs, NA * ny * nx, NO)


def detect_forward(xs):
    """xs: list of NL tensors shaped (bs, na*no, ny, nx) (NCHW).
    Returns (z, x_perm_list) matching Detect.forward semantics."""
    z = []
    x_perm = []
    for i in range(NL):
        bs, _, ny, nx = xs[i].shape
        z.append(detect_level(xs[i], i))
        # Second return value of Detect.forward: the permuted (raw) tensor.
        x_perm.append(
            xs[i].reshape(bs, NA, NO, ny, nx).transpose(0, 1, 3, 4, 2))
    return jnp.concatenate(z, axis=1), x_perm


# ---------------------------------------------------------------------------
# Pure-numpy reference of the PyTorch forward for validation.
# ---------------------------------------------------------------------------
def _sigmoid(v):
    return 1.0 / (1.0 + np.exp(-v))


def detect_forward_ref(xs):
    anchors = np.asarray(ANCHORS, np.float32).reshape(NL, -1, 2)
    z = []
    for i in range(NL):
        bs, _, ny, nx = xs[i].shape
        xi = xs[i].reshape(bs, NA, NO, ny, nx).transpose(0, 1, 3, 4, 2)
        y_idx = np.arange(ny, dtype=np.float32)
        x_idx = np.arange(nx, dtype=np.float32)
        yv, xv = np.meshgrid(y_idx, x_idx, indexing="ij")
        grid = np.stack((xv, yv), axis=2)[None, None] - 0.5
        agrid = (anchors[i] * STRIDES[i]).reshape(1, NA, 1, 1, 2)
        s = _sigmoid(xi)
        xy = (s[..., 0:2] * 2 + grid) * STRIDES[i]
        wh = (s[..., 2:4] * 2) ** 2 * agrid
        y = np.concatenate((xy, wh, s[..., 4:]), axis=4)
        z.append(y.reshape(bs, NA * ny * nx, NO))
    return np.concatenate(z, axis=1)


if __name__ == "__main__":
    key = jax.random.PRNGKey(0)
    bs = 2
    spatial = [8, 4, 2]   # ny == nx per level (small test shapes)
    xs = []
    for s in spatial:
        key, sub = jax.random.split(key)
        xs.append(jax.random.normal(sub, (bs, NA * NO, s, s), dtype=jnp.float32))

    z, x_perm = detect_forward(xs)
    z = jax.block_until_ready(z)

    # sanity-check against the pure-numpy PyTorch-equivalent reference
    z_ref = detect_forward_ref([np.asarray(x) for x in xs])
    np.testing.assert_allclose(np.asarray(z), z_ref, rtol=1e-4, atol=1e-4)
    expected = (bs, sum(NA * s * s for s in spatial), NO)
    assert z.shape == expected, (z.shape, expected)

    print("KERNEL_OK")
</pallas_src>

<mosaic_0001>
module attributes {stable_mosaic.version = 11 : i64} {
  func.func @detect_kernel(%arg0: i32, %arg1: i32, %arg2: memref<1x85x64xf32, #tpu.memory_space<vmem>>, %arg3: memref<1x85x64xf32, #tpu.memory_space<vmem>>) attributes {dimension_semantics = [#tpu.dimension_semantics<parallel>, #tpu.dimension_semantics<parallel>], iteration_bounds = array<i64: 6, 1>, scalar_prefetch = 0 : i64, scratch_operands = 0 : i64, tpu.core_type = #tpu.core_type<tc>, window_params = [{transform_indices = @transform_0, window_bounds = array<i64: 1, 85, 64>}, {transform_indices = @transform_1, window_bounds = array<i64: 1, 85, 64>}]} {
    %c3_i32 = arith.constant 3 : i32
    %c0_i32 = arith.constant 0 : i32
    %0 = arith.cmpi eq, %c3_i32, %c0_i32 : i32
    %c1_i32 = arith.constant 1 : i32
    %1 = arith.select %0, %c1_i32, %c3_i32 : i32
    %2 = arith.remsi %arg0, %1 : i32
    %c0_i32_0 = arith.constant 0 : i32
    %3 = arith.cmpi ne, %2, %c0_i32_0 : i32
    %c0_i32_1 = arith.constant 0 : i32
    %4 = arith.cmpi slt, %2, %c0_i32_1 : i32
    %c0_i32_2 = arith.constant 0 : i32
    %5 = arith.cmpi slt, %1, %c0_i32_2 : i32
    %6 = arith.xori %4, %5 : i1
    %7 = arith.andi %6, %3 : i1
    %8 = arith.addi %2, %1 : i32
    %9 = arith.select %7, %8, %2 : i32
    %c0_i32_3 = arith.constant 0 : i32
    %10 = arith.cmpi eq, %9, %c0_i32_3 : i32
    %c1_i32_4 = arith.constant 1 : i32
    %11 = arith.cmpi eq, %9, %c1_i32_4 : i32
    %cst = arith.constant 1.600000e+01 : f32
    %cst_5 = arith.constant 3.300000e+01 : f32
    %12 = arith.select %11, %cst, %cst_5 : f32
    %cst_6 = arith.constant 1.000000e+01 : f32
    %13 = arith.select %10, %cst_6, %12 : f32
    %c0_i32_7 = arith.constant 0 : i32
    %14 = arith.cmpi eq, %9, %c0_i32_7 : i32
    %c1_i32_8 = arith.constant 1 : i32
    %15 = arith.cmpi eq, %9, %c1_i32_8 : i32
    %cst_9 = arith.constant 3.000000e+01 : f32
    %cst_10 = arith.constant 2.300000e+01 : f32
    %16 = arith.select %15, %cst_9, %cst_10 : f32
    %cst_11 = arith.constant 1.300000e+01 : f32
    %17 = arith.select %14, %cst_11, %16 : f32
    %c64_i32 = arith.constant 64 : i32
    %18 = arith.muli %arg1, %c64_i32 : i32
    %19 = arith.sitofp %18 : i32 to f32
    %20 = tpu.iota {dimensions = array<i32: 1>} : vector<1x64xi32>
    %21 = arith.sitofp %20 : vector<1x64xi32> to vector<1x64xf32>
    %22 = vector.broadcast %19 : f32 to vector<1x64xf32>
    %23 = arith.addf %22, %21 : vector<1x64xf32>
    %cst_12 = arith.constant 5.000000e-01 : f32
    %24 = vector.broadcast %cst_12 : f32 to vector<1x64xf32>
    %25 = arith.addf %23, %24 : vector<1x64xf32>
    %cst_13 = arith.constant 1.250000e-01 : f32
    %26 = vector.broadcast %cst_13 : f32 to vector<1x64xf32>
    %27 = arith.mulf %25, %26 : vector<1x64xf32>
    %28 = math.floor %27 : vector<1x64xf32>
    %cst_14 = arith.constant 8.000000e+00 : f32
    %29 = vector.broadcast %cst_14 : f32 to vector<1x64xf32>
    %30 = arith.mulf %28, %29 : vector<1x64xf32>
    %31 = arith.subf %23, %30 : vector<1x64xf32>
    %cst_15 = arith.constant 5.000000e-01 : f32
    %32 = vector.broadcast %cst_15 : f32 to vector<1x64xf32>
    %33 = arith.subf %31, %32 : vector<1x64xf32>
    %cst_16 = arith.constant 5.000000e-01 : f32
    %34 = vector.broadcast %cst_16 : f32 to vector<1x64xf32>
    %35 = arith.subf %28, %34 : vector<1x64xf32>
    %c0 = arith.constant 0 : index
    %c0_17 = arith.constant 0 : index
    %c0_18 = arith.constant 0 : index
    %36 = vector.load %arg2[%c0, %c0_17, %c0_18] : memref<1x85x64xf32, #tpu.memory_space<vmem>>, vector<1x85x64xf32>
    %37 = vector.shape_cast %36 : vector<1x85x64xf32> to vector<85x64xf32>
    %38 = arith.negf %37 : vector<85x64xf32>
    %39 = math.exp %38 : vector<85x64xf32>
    %cst_19 = arith.constant 1.000000e+00 : f32
    %40 = vector.broadcast %cst_19 : f32 to vector<85x64xf32>
    %41 = arith.addf %40, %39 : vector<85x64xf32>
    %42 = arith.divf %40, %41 : vector<85x64xf32>
    %43 = tpu.iota {dimensions = array<i32: 0>} : vector<85x64xi32>
    %c0_i32_20 = arith.constant 0 : i32
    %44 = vector.broadcast %c0_i32_20 : i32 to vector<85x64xi32>
    %45 = arith.cmpi eq, %43, %44 : vector<85x64xi32>
    %46 = vector.shape_cast %33 : vector<1x64xf32> to vector<1x64xf32>
    %47 = vector.broadcast %46 : vector<1x64xf32> to vector<85x64xf32>
    %48 = vector.shape_cast %35 : vector<1x64xf32> to vector<1x64xf32>
    %49 = vector.broadcast %48 : vector<1x64xf32> to vector<85x64xf32>
    %50 = arith.select %45, %47, %49 : vector<85x64xi1>, vector<85x64xf32>
    %c2_i32 = arith.constant 2 : i32
    %51 = vector.broadcast %c2_i32 : i32 to vector<85x64xi32>
    %52 = arith.cmpi eq, %43, %51 : vector<85x64xi32>
    %53 = vector.broadcast %13 : f32 to vector<85x64xf32>
    %54 = vector.broadcast %17 : f32 to vector<85x64xf32>
    %55 = arith.select %52, %53, %54 : vector<85x64xi1>, vector<85x64xf32>
    %cst_21 = arith.constant 2.000000e+00 : f32
    %56 = vector.broadcast %cst_21 : f32 to vector<85x64xf32>
    %57 = arith.mulf %42, %56 : vector<85x64xf32>
    %58 = arith.addf %57, %50 : vector<85x64xf32>
    %cst_22 = arith.constant 8.000000e+00 : f32
    %59 = vector.broadcast %cst_22 : f32 to vector<85x64xf32>
    %60 = arith.mulf %58, %59 : vector<85x64xf32>
    %cst_23 = arith.constant 2.000000e+00 : f32
    %61 = vector.broadcast %cst_23 : f32 to vector<85x64xf32>
    %62 = arith.mulf %42, %61 : vector<85x64xf32>
    %63 = arith.mulf %62, %62 : vector<85x64xf32>
    %64 = arith.mulf %63, %55 : vector<85x64xf32>
    %c2_i32_24 = arith.constant 2 : i32
    %65 = vector.broadcast %c2_i32_24 : i32 to vector<85x64xi32>
    %66 = arith.cmpi slt, %43, %65 : vector<85x64xi32>
    %c4_i32 = arith.constant 4 : i32
    %67 = vector.broadcast %c4_i32 : i32 to vector<85x64xi32>
    %68 = arith.cmpi slt, %43, %67 : vector<85x64xi32>
    %69 = arith.select %68, %64, %42 : vector<85x64xi1>, vector<85x64xf32>
    %70 = arith.select %66, %60, %69 : vector<85x64xi1>, vector<85x64xf32>
    %c0_25 = arith.constant 0 : index
    %c0_26 = arith.constant 0 : index
    %c0_27 = arith.constant 0 : index
    %71 = vector.load %arg3[%c0_25, %c0_26, %c0_27] : memref<1x85x64xf32, #tpu.memory_space<vmem>>, vector<1x85x64xf32>
    %72 = vector.shape_cast %71 : vector<1x85x64xf32> to vector<85x64xf32>
    %73 = vector.shape_cast %70 : vector<85x64xf32> to vector<1x85x64xf32>
    tpu.vector_store %arg3[%c0_25, %c0_26, %c0_27], %73 {strides = array<i32>} : memref<1x85x64xf32, #tpu.memory_space<vmem>>, vector<1x85x64xf32>,
    return
  }
  func.func @transform_0(%arg0: i32, %arg1: i32) -> (i32, i32, i32) {
    %c0_i32 = arith.constant 0 : i32
    %c0_i32_0 = arith.constant 0 : i32
    return %arg0, %c0_i32, %arg1 : i32, i32, i32
  }
  func.func @transform_1(%arg0: i32, %arg1: i32) -> (i32, i32, i32) {
    %c0_i32 = arith.constant 0 : i32
    %c0_i32_0 = arith.constant 0 : i32
    return %arg0, %c0_i32, %arg1 : i32, i32, i32
  }
}

</mosaic_0001>

<bundles_post_ra>
// kernel: tpu_custom_call.1
= control target key start
LH: loop header
LB: loop body
LE: loop exit
PB: predicated region body
PF: predicated region fallthrough
CT: control target
= control target key end

     0   :  { %s786_s6 = smov 0   ;;  %s788_s7 = smov 0   ;;  %s1079_s0 = inlined_call_operand.vmem [shape: f32[6,85,64], index: 0, kind: input, shape index: {}]   ;;  %s1080_s1 = inlined_call_operand.vmem [shape: f32[6,85,64], index: 1, kind: output, shape index: {}]  }
   0x1   :  { %s790_s8 = smov 0  }
   0x2 LB: > { %s23_s9 = sadd.s32 1, %s770_s7  ;;  %p658_p0 = scmp.ge.s32.totalorder %s774_s8, 1  ;;  %s774_s8 = sphi %s790_s8, %s11_s8   ;;  %s770_s7 = sphi %s788_s7, %s1119_s7   ;;  %s766_s6 = sphi %s786_s6, %s1118_s6  }
   0x3   : > { %p25_p1 = scmp.ge.s32.totalorder %s23_s9, 6  ;;  %p106_p2 = scmp.lt.s32.totalorder %s774_s8, 7 }
   0x5   : > { %s1121_s9 = smov (%p25_p1, %s23_s9), 0  ;;  %p107_p3 = pnand %p658_p0, %p106_p2 }
   0x6   : > { %p132_p4 = scmp.lt.s32.totalorder (!%p107_p3), %s766_s6, 5  ;;  %s149_s10 = ssub.s32 (!%p107_p3), 0, %s766_s6 }
   0x7   : > { %110 = sbr.rel (%p107_p3) target bundleno = 83 (0x53), region = 24  ;;  %s661_s12 = smin.u32 (!%p107_p3), %s766_s6, %s149_s10 }
   0x8   : > { %705 = sdivrem.u32 (!%p107_p3), %s661_s12, 3  ;;  %p148_p5 = scmp.lt.s32.totalorder (!%p107_p3), %s766_s6, 0 }
   0xc   : > { %v169_v0 = vlaneseq  ;;  %s809_s11 = scalar_select %p132_p4, %s766_s6, 5 }
   0xe   : > { %v170_v1 = vand.u32 127, %v169_v0  ;;  %s679_s13 = smul.u32 88, %s809_s11  ;;  %v830_v26 = vshrl.u32 %v169_v0, 7 }
  0x10   : > { %v171_v2 = vcvt.s32.f32 %v170_v1  ;;  %s818_s16 = scalar_lea.vmem %s1079_s0, %s679_s13  ;;  %vm413_vm0 = vcmp.eq.s32.totalorder %v830_v26, 0  ;;  %vm435_vm1 = vcmp.eq.s32.totalorder %v830_v26, 2  ;;  %vm525_vm14 = vcmp.lt.s32.totalorder %v830_v26, 4  ;;  %s958_s25 = scalar_lea.vmem %s1080_s1, %s679_s13 }
  0x11   : > { %v181_v4 = vld [vmem:[%s818_s16] sm:$0xff]  ;;  %v182_v5 = vld [vmem:[%s818_s16 + $0x8] sm:$0xff]  ;;  %v183_v6 = vld [vmem:[%s818_s16 + $0x10] sm:$0xff]  ;;  %s706_s17 = spop.drf %705  ;;  %vm514_vm7 = vcmp.lt.s32.totalorder %v830_v26, 2 }
  0x12   : > { %v174_v3 = vadd.f32 0.5, %v171_v2  ;;  %v666_v8 = vmul.f32 -1.442695, %v181_v4  ;;  %v184_v9 = vld [vmem:[%s818_s16 + $0x18] sm:$0xff]  ;;  %v667_v10 = vmul.f32 -1.442695, %v182_v5  ;;  %s707_s18 = spop.drf %705 }
  0x13   : > { %v668_v11 = vmul.f32 -1.442695, %v183_v6  ;;  %v669_v12 = vmul.f32 -1.442695, %v184_v9  ;;  %v185_v14 = vld [vmem:[%s818_s16 + $0x20] sm:$0xff]  ;;  %v186_v15 = vld [vmem:[%s818_s16 + $0x28] sm:$0xff] }
  0x14   : > { %v175_v7 = vmul.f32 0.125, %v174_v3  ;;  %708 = vpow2.f32 %v666_v8  ;;  %v187_v16 = vld [vmem:[%s818_s16 + $0x30] sm:$0xff]  ;;  %v670_v17 = vmul.f32 -1.442695, %v185_v14  ;;  %v671_v18 = vmul.f32 -1.442695, %v186_v15 }
  0x15   : > { %710 = vpow2.f32 %v667_v10  ;;  %v188_v19 = vld [vmem:[%s818_s16 + $0x38] sm:$0xff]  ;;  %v672_v21 = vmul.f32 -1.442695, %v187_v16  ;;  %v189_v24 = vld [vmem:[%s818_s16 + $0x40] sm:$0xff]  ;;  %s153_s19 = ssub.s32 0, %s707_s18  ;;  %v190_v30 = vld [vmem:[%s818_s16 + $0x48] sm:$0xff] }
  0x16   : > { %v176_v13 = vfloor.f32 %v175_v7  ;;  %712 = vpow2.f32 %v668_v11  ;;  %v673_v23 = vmul.f32 -1.442695, %v188_v19  ;;  %s1123_s19 = smov (!%p148_p5, %s153_s19), %s707_s18  ;;  %v674_v34 = vmul.f32 -1.442695, %v189_v24 }
  0x17   : > { %714 = vpow2.f32 %v669_v12  ;;  %p663_p6 = scmp.lt.s32.totalorder %s1123_s19, 0  ;;  %s159_s20 = sadd.s32 3, %s1123_s19  ;;  %v845_v39 = vmul.f32 -1.442695, %v190_v30 }
  0x18   : > { %v177_v20 = vmul.f32 8.0, %v176_v13  ;;  %716 = vpow2.f32 %v670_v17  ;;  %v665_v28 = vadd.f32 -0.5, %v176_v13 }
  0x19   : > { %718 = vpow2.f32 %v671_v18  ;;  %s1125_s20 = smov (!%p663_p6, %s159_s20), %s1123_s19 }
  0x1a   : > { %v178_v22 = vsub.f32 %v171_v2, %v177_v20  ;;  %v709_v25 = vpop.eup %708  ;;  %720 = vpow2.f32 %v672_v21  ;;  %p161_p7 = scmp.eq.s32.totalorder %s1125_s20, 0  ;;  %p162_p8 = scmp.eq.s32.totalorder %s1125_s20, 1 }
  0x1b   : > { %v711_v27 = vpop.eup %710  ;;  %v834_v29 = vadd.f32 1.0, %v709_v25  ;;  %722 = vpow2.f32 %v673_v23 }
  0x1c   : > { %v713_v31 = vpop.eup %712  ;;  %v664_v32 = vadd.f32 -0.5, %v178_v22  ;;  %v837_v33 = vadd.f32 1.0, %v711_v27  ;;  %s163_s21 = scalar_select %p162_p8, 16.0, 33.0 }
  0x1d   : > { %v715_v35 = vpop.eup %714  ;;  %724 = vrcp.f32 %v834_v29  ;;  %v247_v36 = vand.u32 2147483648, %v834_v29  ;;  %v245_v38 = vand.u32 2147483647, %v834_v29  ;;  %v851_v43 = vadd.f32 1.0, %v713_v31  ;;  %s165_s22 = scalar_select %p162_p8, 30.0, 23.0 }
  0x1e   : > { %v717_v37 = vpop.eup %716  ;;  %726 = vrcp.f32 %v837_v33  ;;  %v260_v41 = vand.u32 2147483647, %v837_v33  ;;  %v262_v42 = vand.u32 2147483648, %v837_v33  ;;  %v853_v44 = vadd.f32 1.0, %v715_v35  ;;  %s1127_s21 = smov (%p161_p7, %s163_s21), 10.0 }
  0x1f   : > { %v719_v40 = vpop.eup %718  ;;  %vm241_vm2 = vweird.f32 %v834_v29  ;;  %v856_v45 = vsel %vm413_vm0, %v664_v32, %v665_v28  ;;  %v858_v46 = vadd.f32 1.0, %v717_v37  ;;  %728 = vpow2.f32 %v674_v34  ;;  %s1129_s22 = smov (%p161_p7, %s165_s22), 13.0 }
  0x20   : > { %v860_v47 = vpop.eup %720  ;;  %v864_v48 = vor.u32 1.1754944e-38, %v247_v36  ;;  %vm256_vm3 = vweird.f32 %v837_v33  ;;  %730 = vrcp.f32 %v851_v43  ;;  %v277_v49 = vand.u32 2147483648, %v851_v43 }
  0x21   : > { %v869_v50 = vpop.eup %722  ;;  %vm871_vm4 = vcmp.eq.f32.partialorder %v245_v38, 8.507059e+37  ;;  %v275_v52 = vand.u32 2147483647, %v851_v43  ;;  %732 = vrcp.f32 %v853_v44  ;;  %v292_v53 = vand.u32 2147483648, %v853_v44 }
  0x22   : > { %v878_v54 = vadd.f32 1.0, %v719_v40  ;;  %vm884_vm5 = vcmp.eq.f32.partialorder %v260_v41, 8.507059e+37  ;;  %v888_v57 = vor.u32 1.1754944e-38, %v262_v42  ;;  %vm271_vm6 = vweird.f32 %v851_v43 }
  0x23   : > { %v880_v55 = vpop.eup %724  ;;  %v290_v58 = vand.u32 2147483647, %v853_v44  ;;  %734 = vrcp.f32 %v858_v46  ;;  %v897_v61 = vor.u32 1.1754944e-38, %v277_v49  ;;  %vm286_vm8 = vweird.f32 %v853_v44 }
  0x24   : > { %v727_v59 = vpop.eup %726  ;;  %v237_v60 = vmul.f32 %v880_v55, %v834_v29  ;;  %vm242_vm10 = vweird.f32 %v880_v55  ;;  %v305_v63 = vand.u32 2147483647, %v858_v46  ;;  %v307_v0 = vand.u32 2147483648, %v858_v46 }
  0x25   : > { %v252_v62 = vmul.f32 %v727_v59, %v837_v33  ;;  %v907_v1 = vpop.eup %728  ;;  %vm257_vm11 = vweird.f32 %v727_v59  ;;  %vm911_vm12 = vcmp.eq.f32.partialorder %v275_v52, 8.507059e+37  ;;  %v915_v4 = vor.u32 1.1754944e-38, %v292_v53  ;;  %vm934_vm0 = vmor %vm241_vm2, %vm242_vm10 }
  0x26   : > { %v238_v2 = vsub.f32 1.0, %v237_v60  ;;  %736 = vrcp.f32 %v878_v54  ;;  %v731_v5 = vpop.eup %730  ;;  %v446_v6 = vstv %s1127_s21  ;;  %vm918_vm13 = vcmp.eq.f32.partialorder %v290_v58, 8.507059e+37  ;;  %vm947_vm2 = vmor %vm256_vm3, %vm257_vm11 }
  0x27   : > { %v253_v7 = vsub.f32 1.0, %v252_v62  ;;  %v320_v9 = vand.u32 2147483647, %v878_v54  ;;  %v733_v10 = vpop.eup %732  ;;  %v447_v12 = vstv %s1129_s22  ;;  %v267_v13 = vmul.f32 %v731_v5, %v851_v43 }
  0x28   : > { %v239_v11 = vmul.f32 %v880_v55, %v238_v2  ;;  %vm926_vm15 = vcmp.eq.f32.partialorder %v305_v63, 8.507059e+37  ;;  %v308_v15 = vor.u32 1.1754944e-38, %v307_v0  ;;  %v448_v18 = vsel %vm435_vm1, %v446_v6, %v447_v12  ;;  %v191_v63 = vld [vmem:[%s818_s16 + $0x50] sm:$0x1f] }
  0x29   : > { %v735_v16 = vpop.eup %734  ;;  %v254_v19 = vmul.f32 %v727_v59, %v253_v7  ;;  %vm272_vm9 = vweird.f32 %v731_v5  ;;  %v282_v20 = vmul.f32 %v733_v10, %v853_v44  ;;  %v268_v23 = vsub.f32 1.0, %v267_v13 }
  0x2a   : > { %v240_v21 = vadd.f32 %v880_v55, %v239_v11  ;;  %vm287_vm1 = vweird.f32 %v733_v10  ;;  %v297_v24 = vmul.f32 %v735_v16, %v858_v46  ;;  %vm302_vm10 = vweird.f32 %v735_v16  ;;  %vm974_vm3 = vmor %vm271_vm6, %vm272_vm9 }
  0x2b   : > { %v255_v25 = vadd.f32 %v727_v59, %v254_v19  ;;  %v283_v27 = vsub.f32 1.0, %v282_v20  ;;  %v322_v28 = vand.u32 2147483648, %v878_v54  ;;  %v269_v31 = vmul.f32 %v731_v5, %v268_v23 }
  0x2c   : > { %v737_v29 = vpop.eup %736  ;;  %v244_v30 = vsel %vm934_vm0, %v880_v55, %v240_v21  ;;  %v298_v32 = vsub.f32 1.0, %v297_v24  ;;  %v964_v33 = vadd.f32 1.0, %v860_v47  ;;  %vm1099_vm6 = vcmask 523264  }
  0x2d   : > { %v249_v34 = vsel %vm871_vm4, %v864_v48, %v244_v30  ;;  %v259_v35 = vsel %vm947_vm2, %v727_v59, %v255_v25  ;;  %v284_v37 = vmul.f32 %v733_v10, %v283_v27  ;;  %v312_v38 = vmul.f32 %v737_v29, %v878_v54  ;;  %vm985_vm4 = vmor %vm286_vm8, %vm287_vm1 }
  0x2e   : > { %v459_v40 = vmul.f32 2.0, %v249_v34  ;;  %v264_v41 = vsel %vm884_vm5, %v888_v57, %v259_v35  ;;  %v270_v42 = vadd.f32 %v731_v5, %v269_v31  ;;  %v299_v43 = vmul.f32 %v735_v16, %v298_v32  ;;  %vm1103_vm8 = vmmov %vm1099_vm6 }
  0x2f   : > { %560 = vst.msk [vmem:[%s958_s25 + $0x8] sm:$0xff] %vm1099_vm6, %v264_v41  ;;  %v285_v48 = vadd.f32 %v733_v10, %v284_v37  ;;  %vm1100_vm9 = vweird.f32 %v858_v46  ;;  %v313_v51 = vsub.f32 1.0, %v312_v38  ;;  %vm317_vm5 = vweird.f32 %v737_v29  ;;  %vm1107_vm2 = vmmov %vm1099_vm6 }
  0x30   : > { %vm994_vm11 = vmor %vm1100_vm9, %vm302_vm10  ;;  %v323_v44 = vor.u32 1.1754944e-38, %v322_v28  ;;  %v470_v52 = vadd.f32 %v459_v40, %v856_v45  ;;  %v492_v53 = vmul.f32 %v459_v40, %v459_v40  ;;  %v274_v55 = vsel %vm974_vm3, %v731_v5, %v270_v42 }
  0x31   : > { %v300_v56 = vadd.f32 %v735_v16, %v299_v43  ;;  %v279_v46 = vsel %vm911_vm12, %v897_v61, %v274_v55  ;;  %v289_v57 = vsel %vm985_vm4, %v733_v10, %v285_v48  ;;  %v314_v58 = vmul.f32 %v737_v29, %v313_v51  ;;  %vm1108_vm1 = vmmov %vm1107_vm2 }
  0x32   : > { %738 = vrcp.f32 %v964_v33  ;;  %v481_v59 = vmul.f32 8.0, %v470_v52  ;;  %v503_v60 = vmul.f32 %v492_v53, %v448_v18  ;;  %561 = vst.msk [vmem:[%s958_s25 + $0x10] sm:$0xff] %vm1103_vm8, %v279_v46  ;;  %v294_v45 = vsel %vm918_vm13, %v915_v4, %v289_v57  ;;  %vm1115_vm8 = vmmov %vm1108_vm1 }
  0x33   : > { %v304_v62 = vsel %vm994_vm11, %v735_v16, %v300_v56  ;;  %vm1104_vm12 = vweird.f32 %v878_v54  ;;  %562 = vst.msk [vmem:[%s958_s25 + $0x18] sm:$0xff] %vm1107_vm2, %v294_v45  ;;  %v315_v2 = vadd.f32 %v737_v29, %v314_v58  ;;  %vm321_vm13 = vcmp.eq.f32.partialorder %v320_v9, 8.507059e+37 }
  0x34   : > { %vm1017_vm0 = vmor %vm1104_vm12, %vm317_vm5  ;;  %v309_v0 = vsel %vm926_vm15, %v308_v15, %v304_v62  ;;  %v536_v3 = vsel %vm525_vm14, %v503_v60, %v249_v34  ;;  %v232_v4 = vadd.f32 1.0, %v869_v50  ;;  %v233_v5 = vadd.f32 1.0, %v907_v1 }
  0x35   : > { %563 = vst.msk [vmem:[%s958_s25 + $0x20] sm:$0xff] %vm1108_vm1, %v309_v0  ;;  %v547_v6 = vsel %vm514_vm7, %v481_v59, %v536_v3  ;;  %v319_v7 = vsel %vm1017_vm0, %v737_v29, %v315_v2  ;;  %740 = vpow2.f32 %v845_v39  ;;  %v676_v8 = vmul.f32 -1.442695, %v191_v63  ;;  %vm1109_vm15 = vmmov %vm1108_vm1 }
  0x36   : > { %559 = vst.msk [vmem:[%s958_s25] sm:$0xff] %vm1109_vm15, %v547_v6  ;;  %v324_v54 = vsel %vm321_vm13, %v323_v44, %v319_v7  ;;  %742 = vrcp.f32 %v232_v4  ;;  %vm1110_vm14 = vmmov %vm1108_vm1  ;;  %v335_v1 = vand.u32 2147483647, %v964_v33  ;;  %v337_v26 = vand.u32 2147483648, %v964_v33 }
  0x37   : > { %564 = vst.msk [vmem:[%s958_s25 + $0x28] sm:$0xff] %vm1110_vm14, %v324_v54  ;;  %744 = vrcp.f32 %v233_v5  ;;  %vm331_vm7 = vweird.f32 %v964_v33  ;;  %vm346_vm6 = vweird.f32 %v232_v4  ;;  %v350_v19 = vand.u32 2147483647, %v232_v4 }
  0x38   : > { %v739_v9 = vpop.eup %738  ;;  %746 = vpow2.f32 %v676_v8  ;;  %vm1047_vm3 = vcmp.eq.f32.partialorder %v335_v1, 8.507059e+37  ;;  %v338_v14 = vor.u32 1.1754944e-38, %v337_v26  ;;  %v352_v20 = vand.u32 2147483648, %v232_v4 }
  0x39   : > { %v327_v50 = vmul.f32 %v739_v9, %v964_v33  ;;  %vm332_vm10 = vweird.f32 %v739_v9  ;;  %vm361_vm9 = vweird.f32 %v233_v5  ;;  %v365_v25 = vand.u32 2147483647, %v233_v5 }
  0x3a   : > { %vm1051_vm4 = vmor %vm331_vm7, %vm332_vm10  ;;  %v367_v27 = vand.u32 2147483648, %v233_v5  ;;  %v353_v33 = vor.u32 1.1754944e-38, %v352_v20  ;;  %vm351_vm0 = vcmp.eq.f32.partialorder %v350_v19, 8.507059e+37 }
  0x3b   : > { %v328_v10 = vsub.f32 1.0, %v327_v50  ;;  %v741_v39 = vpop.eup %740  ;;  %vm366_vm13 = vcmp.eq.f32.partialorder %v365_v25, 8.507059e+37  ;;  %vm1116_vm7 = vmmov %vm1108_vm1 }
  0x3c   : > { %v743_v11 = vpop.eup %742  ;;  %v234_v15 = vadd.f32 1.0, %v741_v39  ;;  %v368_v36 = vor.u32 1.1754944e-38, %v367_v27 }
  0x3d   : > { %v329_v12 = vmul.f32 %v739_v9, %v328_v10  ;;  %v745_v16 = vpop.eup %744  ;;  %v342_v18 = vmul.f32 %v743_v11, %v232_v4  ;;  %vm347_vm11 = vweird.f32 %v743_v11 }
  0x3e   : > { %v357_v22 = vmul.f32 %v745_v16, %v233_v5  ;;  %748 = vrcp.f32 %v234_v15  ;;  %v747_v23 = vpop.eup %746  ;;  %vm362_vm5 = vweird.f32 %v745_v16  ;;  %vm348_vm12 = vmor %vm346_vm6, %vm347_vm11  ;;  %v380_v43 = vand.u32 2147483647, %v234_v15 }
  0x3f   : > { %v330_v21 = vadd.f32 %v739_v9, %v329_v12  ;;  %v343_v24 = vsub.f32 1.0, %v342_v18  ;;  %v235_v30 = vadd.f32 1.0, %v747_v23  ;;  %vm363_vm2 = vmor %vm361_vm9, %vm362_vm5  ;;  %v382_v48 = vand.u32 2147483648, %v234_v15 }
  0x40   : > { %v358_v29 = vsub.f32 1.0, %v357_v22  ;;  %vm376_vm15 = vweird.f32 %v234_v15  ;;  %vm1117_vm11 = vmmov %vm1108_vm1 }
  0x41   : > { %v334_v28 = vsel %vm1051_vm4, %v739_v9, %v330_v21  ;;  %v344_v32 = vmul.f32 %v743_v11, %v343_v24  ;;  %750 = vrcp.f32 %v235_v30  ;;  %v383_v55 = vor.u32 1.1754944e-38, %v382_v48 }
  0x42   : > { %v339_v31 = vsel %vm1047_vm3, %v338_v14, %v334_v28  ;;  %v359_v34 = vmul.f32 %v745_v16, %v358_v29  ;;  %vm381_vm3 = vcmp.eq.f32.partialorder %v380_v43, 8.507059e+37  ;;  %vm391_vm4 = vweird.f32 %v235_v30 }
  0x43   : > { %565 = vst.msk [vmem:[%s958_s25 + $0x30] sm:$0xff] %vm1115_vm8, %v339_v31  ;;  %v345_v35 = vadd.f32 %v743_v11, %v344_v32  ;;  %v397_v56 = vand.u32 2147483648, %v235_v30  ;;  %v395_v58 = vand.u32 2147483647, %v235_v30  ;;  %vm569_vm8 = vcmask 520192  }
  0x44   : > { %v749_v37 = vpop.eup %748  ;;  %v360_v38 = vadd.f32 %v745_v16, %v359_v34 }
  0x45   : > { %v349_v40 = vsel %vm348_vm12, %v743_v11, %v345_v35  ;;  %v372_v41 = vmul.f32 %v749_v37, %v234_v15  ;;  %vm377_vm14 = vweird.f32 %v749_v37  ;;  %v398_v62 = vor.u32 1.1754944e-38, %v397_v56 }
  0x46   : > { %v354_v42 = vsel %vm351_vm0, %v353_v33, %v349_v40  ;;  %v364_v47 = vsel %vm363_vm2, %v745_v16, %v360_v38  ;;  %vm378_vm10 = vmor %vm376_vm15, %vm377_vm14  ;;  %vm396_vm5 = vcmp.eq.f32.partialorder %v395_v58, 8.507059e+37 }
  0x47   : > { %566 = vst.msk [vmem:[%s958_s25 + $0x38] sm:$0xff] %vm1108_vm1, %v354_v42  ;;  %v369_v49 = vsel %vm366_vm13, %v368_v36, %v364_v47  ;;  %v373_v51 = vsub.f32 1.0, %v372_v41  ;;  %v751_v44 = vpop.eup %750 }
  0x48   : > { %567 = vst.msk [vmem:[%s958_s25 + $0x40] sm:$0xff] %vm1116_vm7, %v369_v49  ;;  %v387_v53 = vmul.f32 %v751_v44, %v235_v30  ;;  %vm392_vm6 = vweird.f32 %v751_v44 }
  0x49   : > { %v374_v52 = vmul.f32 %v749_v37, %v373_v51  ;;  %vm393_vm9 = vmor %vm391_vm4, %vm392_vm6 }
  0x4a   : > { %v388_v57 = vsub.f32 1.0, %v387_v53 }
  0x4b   : > { %v375_v46 = vadd.f32 %v749_v37, %v374_v52 }
  0x4c   : > { %v389_v60 = vmul.f32 %v751_v44, %v388_v57 }
  0x4d   : > { %v379_v59 = vsel %vm378_vm10, %v749_v37, %v375_v46 }
  0x4e   : > { %v384_v45 = vsel %vm381_vm3, %v383_v55, %v379_v59  ;;  %v390_v61 = vadd.f32 %v751_v44, %v389_v60 }
  0x4f   : > { %568 = vst.msk [vmem:[%s958_s25 + $0x48] sm:$0xff] %vm1117_vm11, %v384_v45 }
  0x50   : > { %v394_v63 = vsel %vm393_vm9, %v751_v44, %v390_v61 }
  0x51   : > { %v399_v0 = vsel %vm396_vm5, %v398_v62, %v394_v63 }
  0x52   : > { %570 = vst.msk [vmem:[%s958_s25 + $0x50] sm:$0x1f] %vm569_vm8, %v399_v0 }
  0x53 PF: > { %s11_s8 = sadd.s32 1, %s774_s8   ;;  %s1118_s6 = smov %s770_s7 }
  0x54   : > { %p8_p9 = scmp.ge.s32.totalorder %s11_s8, 8   ;;  %s1119_s7 = smov %s1121_s9 }
  0x56   :  { %10 = sbr.rel (!%p8_p9) target bundleno = 2 (0x2), region = 54 }

</bundles_post_ra>
